<compile_context>
chip_gen: v6e
topology: v6e:2x2x1
jax: 0.10.0
libtpu: 0.0.40
codegen_flags: <defaults>
</compile_context>

<pallas_src>
import math
from functools import partial

import jax
import jax.numpy as jnp
from jax.experimental import pallas as pl
from jax.experimental.pallas import tpu as pltpu


def _ceil_div(a, b):
    return -(-a // b)


def _round_up(a, b):
    return _ceil_div(a, b) * b


def _sublane_pack(itemsize):
    # sublane packing: 8 (f32) / 16 (bf16) / 32 (i8)
    return 8 * max(1, 4 // max(itemsize, 1))


# ----------------------------------------------------------------------------
# Kernels (pure elementwise, mem-bound: no MXU, compute stays in x.dtype)
# ----------------------------------------------------------------------------

def _pe_add_kernel(x_ref, pe_ref, o_ref, *, scale):
    # pe_ref either matches x_ref's block shape (flat paths) or broadcasts
    # ((tile_s, 1, D) against (tile_s, B, D) on the 3-D fallback path).
    o_ref[...] = (x_ref[...] * scale + pe_ref[...]).astype(o_ref.dtype)


def _pe_add_dropout_kernel(x_ref, pe_ref, m_ref, o_ref, *, scale):
    o_ref[...] = ((x_ref[...] * scale + pe_ref[...]) * m_ref[...]).astype(o_ref.dtype)


def _pe_repl_kernel(x_ref, pe_ref, o_ref, *, scale, nrep, d):
    # x_ref: (tile_s, nrep*d); pe_ref: (tile_s, d), d % 128 == 0.
    # Static Python loop -> static, lane-aligned slices; no concatenate and no
    # replicated-pe temporary (working set stays at one (tile_s, d) pe block).
    pe = pe_ref[...]
    for b in range(nrep):
        sl = slice(b * d, (b + 1) * d)
        o_ref[:, sl] = (x_ref[:, sl] * scale + pe).astype(o_ref.dtype)


def _pe_repl_dropout_kernel(x_ref, pe_ref, m_ref, o_ref, *, scale, nrep, d):
    pe = pe_ref[...]
    for b in range(nrep):
        sl = slice(b * d, (b + 1) * d)
        o_ref[:, sl] = ((x_ref[:, sl] * scale + pe) * m_ref[:, sl]).astype(o_ref.dtype)


# ----------------------------------------------------------------------------
# pe table (identical to the PyTorch __init__), shape (max_len, 1, D)
# ----------------------------------------------------------------------------

def make_pe_table(d_model, max_len=5000, dtype=jnp.float32):
    position = jnp.arange(max_len, dtype=jnp.float32)[:, None]
    div_term = jnp.exp(
        jnp.arange(0, d_model, 2, dtype=jnp.float32) * (-math.log(10000.0) / d_model))
    ang = position * div_term
    pe = jnp.zeros((max_len, d_model), jnp.float32)
    pe = pe.at[:, 0::2].set(jnp.sin(ang))
    pe = pe.at[:, 1::2].set(jnp.cos(ang))
    return pe[:, None, :].astype(dtype)


# ----------------------------------------------------------------------------
# Tiling helpers
# ----------------------------------------------------------------------------

def _choose_tile_s(S, row_bytes, sub, target_bytes, want_two_steps):
    """Largest seq-tile (multiple of the sublane pack) under the block budget.
    Only enforces >=2 grid steps (v7x megacore) when the sequence allows it."""
    if S <= sub:
        return S
    t = max(1, target_bytes // max(row_bytes, 1))
    t = max(sub, (min(t, S) // sub) * sub)
    t = min(t, S)
    if want_two_steps and t >= S:
        t = min(S, max(sub, _round_up(_ceil_div(S, 2), sub)))
    return t


def _vmem_limit(block_bytes_list):
    need = 2 * sum(block_bytes_list)      # double-buffered pipeline
    need += 2 * max(block_bytes_list)     # headroom for in-kernel temporaries
    # Cap below 64 MiB so large tiles also leave compiler scratch headroom on v7x.
    return int(min(48 << 20, max(need + (2 << 20), 32 << 20)))


# ----------------------------------------------------------------------------
# pallas_call runners (three layouts)
# ----------------------------------------------------------------------------

def _run_flat(x2, pe2, m2, scale, sub, itemsize, target_bytes):
    """x2, pe2 (and mask) share the same 2-D (rows, W) layout; plain block add."""
    S, W = x2.shape
    dtype = x2.dtype

    # Minor-dim tiling (only when W is lane aligned) bounds block bytes even for
    # very wide rows, keeping 2-deep pipelining alive inside v7x's 64 MiB VMEM.
    if W % 128 == 0 and W > 128:
        max_w = max(128, (target_bytes // max(sub * itemsize, 1)) // 128 * 128)
        tile_w = min(W, max_w)
    else:
        tile_w = W
    n_w = _ceil_div(W, tile_w)

    tile_s = _choose_tile_s(S, tile_w * itemsize, sub, target_bytes,
                            want_two_steps=(n_w == 1))
    n_s = _ceil_div(S, tile_s)

    # Keep the block's second-minor dim legal when pe2 has more rows than x2.
    if tile_s % sub != 0 and pe2.shape[0] != S:
        pe2 = pe2[:S]

    spec = pl.BlockSpec((tile_s, tile_w), lambda i, j: (i, j))
    has_mask = m2 is not None
    in_specs = [spec, spec] + ([spec] if has_mask else [])
    args = (x2, pe2) + ((m2,) if has_mask else ())
    kern = _pe_add_dropout_kernel if has_mask else _pe_add_kernel

    block = tile_s * tile_w * itemsize
    blocks = [block] * (4 if has_mask else 3)

    return pl.pallas_call(
        partial(kern, scale=scale),
        out_shape=jax.ShapeDtypeStruct((S, W), dtype),
        grid_spec=pltpu.PrefetchScalarGridSpec(
            num_scalar_prefetch=0,
            grid=(n_s, n_w),
            in_specs=in_specs,
            out_specs=spec,
        ),
        compiler_params=pltpu.CompilerParams(
            dimension_semantics=("parallel", "parallel"),
            vmem_limit_bytes=_vmem_limit(blocks),
        ),
    )(*args)


def _run_repl(x2, pe2, m2, scale, B, D, sub, itemsize, target_bytes):
    """x2: (S, B*D) with D % 128 == 0; pe2: (rows, D). pe applied per-batch chunk."""
    S, W = x2.shape
    dtype = x2.dtype

    chunk = D * itemsize
    max_b = max(1, target_bytes // max(sub * chunk, 1))
    if B <= max_b:
        tile_b = B
    else:
        tile_b = max(d for d in range(1, max_b + 1) if B % d == 0)
    n_b = B // tile_b

    tile_s = _choose_tile_s(S, tile_b * chunk, sub, target_bytes,
                            want_two_steps=(n_b == 1))
    n_s = _ceil_div(S, tile_s)

    if tile_s % sub != 0 and pe2.shape[0] != S:
        pe2 = pe2[:S]

    x_spec = pl.BlockSpec((tile_s, tile_b * D), lambda i, j: (i, j))
    pe_spec = pl.BlockSpec((tile_s, D), lambda i, j: (i, 0))
    has_mask = m2 is not None
    in_specs = [x_spec, pe_spec] + ([x_spec] if has_mask else [])
    args = (x2, pe2) + ((m2,) if has_mask else ())
    kern = _pe_repl_dropout_kernel if has_mask else _pe_repl_kernel

    x_block = tile_s * tile_b * D * itemsize
    pe_block = tile_s * D * itemsize
    blocks = [x_block, x_block, pe_block] + ([x_block] if has_mask else [])

    return pl.pallas_call(
        partial(kern, scale=scale, nrep=tile_b, d=D),
        out_shape=jax.ShapeDtypeStruct((S, W), dtype),
        grid_spec=pltpu.PrefetchScalarGridSpec(
            num_scalar_prefetch=0,
            grid=(n_s, n_b),
            in_specs=in_specs,
            out_specs=x_spec,
        ),
        compiler_params=pltpu.CompilerParams(
            dimension_semantics=("parallel", "parallel"),
            vmem_limit_bytes=_vmem_limit(blocks),
        ),
    )(*args)


def _run_3d(x, pe, mask, scale, sub, itemsize, target_bytes):
    """General fallback: full (B, D) minor dims per block (always legal)."""
    S, B, D = x.shape
    dtype = x.dtype
    row_bytes = _round_up(B, 8) * _round_up(D, 128) * itemsize
    tile_s = _choose_tile_s(S, row_bytes, sub, target_bytes, want_two_steps=True)
    n_s = _ceil_div(S, tile_s)

    x_spec = pl.BlockSpec((tile_s, B, D), lambda i: (i, 0, 0))
    pe_spec = pl.BlockSpec((tile_s, 1, D), lambda i: (i, 0, 0))
    has_mask = mask is not None
    in_specs = [x_spec, pe_spec] + ([x_spec] if has_mask else [])
    args = (x, pe) + ((mask,) if has_mask else ())
    kern = _pe_add_dropout_kernel if has_mask else _pe_add_kernel

    x_block = tile_s * row_bytes
    pe_block = tile_s * _round_up(D, 128) * itemsize
    blocks = [x_block, x_block, pe_block] + ([x_block] if has_mask else [])

    return pl.pallas_call(
        partial(kern, scale=scale),
        out_shape=jax.ShapeDtypeStruct((S, B, D), dtype),
        grid_spec=pltpu.PrefetchScalarGridSpec(
            num_scalar_prefetch=0,
            grid=(n_s,),
            in_specs=in_specs,
            out_specs=x_spec,
        ),
        compiler_params=pltpu.CompilerParams(
            dimension_semantics=("parallel",),
            vmem_limit_bytes=_vmem_limit(blocks),
        ),
    )(*args)


# ----------------------------------------------------------------------------
# Public wrapper (matches PositionalEncoding.forward semantics)
# ----------------------------------------------------------------------------

def positional_encoding(x, pe, *, dropout_p=0.1, train=False, rng_key=None, seed=0,
                        target_block_bytes=4 << 20):
    """x: (S, B, D) seq-first; pe: (max_len, 1, D). Returns (S, B, D) in x.dtype."""
    S, B, D = x.shape
    max_len = pe.shape[0]
    assert pe.shape == (max_len, 1, D) and max_len >= S

    dtype = x.dtype
    itemsize = dtype.itemsize
    sub = _sublane_pack(itemsize)
    scale = math.sqrt(D)

    dropout_p = float(dropout_p)
    use_dropout = bool(train) and dropout_p > 0.0
    if use_dropout and dropout_p >= 1.0:
        return jnp.zeros_like(x)   # torch.nn.Dropout(p=1.0) zeroes everything

    mask = None
    if use_dropout:
        if rng_key is None:
            rng_key = jax.random.PRNGKey(seed)
        # TODO(synk): mask uses the portable JAX PRNG (one extra x-sized HBM stream
        # in train mode); an in-kernel pltpu.prng_random_bits path would avoid it on
        # real TPUs but does not lower in interpret/CPU mode, and neither can
        # bit-match torch's RNG stream (only the keep-probability semantics match).
        keep = jax.random.bernoulli(rng_key, 1.0 - dropout_p, shape=(S, B, D))
        mask = keep.astype(dtype) * (1.0 / (1.0 - dropout_p))

    # --- layout selection --------------------------------------------------
    k_fold = 0
    if B == 1 and D < 128 and 128 % D == 0:
        k = 128 // D
        if k > 1 and S % k == 0:
            k_fold = k

    if k_fold:
        # Fold k sequence rows into lanes -> minor dim exactly 128 (lane-dense
        # loads/stores, no masked vst). Contiguous reshapes only.
        Sf, Wf = S // k_fold, k_fold * D
        x2 = x.reshape(S, D).reshape(Sf, Wf)
        if max_len % k_fold == 0:
            pe2 = pe.reshape(max_len, D).reshape(max_len // k_fold, Wf)
        else:
            pe2 = pe[:S].reshape(S, D).reshape(Sf, Wf)
        pe2 = pe2.astype(dtype)
        m2 = mask.reshape(Sf, Wf) if mask is not None else None
        out2 = _run_flat(x2, pe2, m2, scale, sub, itemsize, target_block_bytes)
        return out2.reshape(S, B, D)

    if B == 1:
        # Lane/sublane-dense 2-D slab; pe stays the small (max_len, D) table.
        x2 = x.reshape(S, D)
        pe2 = pe.reshape(max_len, D).astype(dtype)
        m2 = mask.reshape(S, D) if mask is not None else None
        out2 = _run_flat(x2, pe2, m2, scale, sub, itemsize, target_block_bytes)
        return out2.reshape(S, B, D)

    if D % 128 == 0:
        # (S, B*D) slab; pe block stays (tile_s, D) and is applied per-batch chunk
        # inside the kernel with static aligned slices.
        x2 = x.reshape(S, B * D)
        pe2 = pe.reshape(max_len, D).astype(dtype)
        m2 = mask.reshape(S, B * D) if mask is not None else None
        out2 = _run_repl(x2, pe2, m2, scale, B, D, sub, itemsize, target_block_bytes)
        return out2.reshape(S, B, D)

    # General fallback (B > 1, D not lane aligned, no fold possible).
    return _run_3d(x, pe.astype(dtype), mask, scale, sub, itemsize, target_block_bytes)


# ----------------------------------------------------------------------------
# Self-test
# ----------------------------------------------------------------------------

if __name__ == "__main__":
    key = jax.random.PRNGKey(0)

    def ref_forward(x, pe):
        S = x.shape[0]
        return (x * math.sqrt(x.shape[-1]) + pe[:S].astype(x.dtype)).astype(x.dtype)

    configs = [
        # (S, B, D, dtype) — covers every layout path.
        (8, 2, 32, jnp.float32),     # 3-D fallback (B > 1, D % 128 != 0)
        (16, 1, 32, jnp.float32),    # fold path: 4 rows folded into 128 lanes
        (12, 1, 40, jnp.float32),    # flat B==1, non-foldable narrow D
        (16, 1, 256, jnp.float32),   # flat B==1, lane-aligned D, 2 grid steps
        (64, 2, 128, jnp.float32),   # repl path: per-batch aligned pe chunks
        (64, 4, 128, jnp.bfloat16),  # repl path, bf16 compute with bf16 pe
    ]

    for idx, (S, B, D, dtype) in enumerate(configs):
        key, subkey = jax.random.split(key)
        x = jax.random.normal(subkey, (S, B, D), dtype=jnp.float32).astype(dtype)
        pe = make_pe_table(D, max_len=max(64, S))

        out = jax.block_until_ready(
            positional_encoding(x, pe, dropout_p=0.1, train=False))
        ref = ref_forward(x, pe)
        assert out.shape == (S, B, D) and out.dtype == x.dtype
        tol = 1e-5 if dtype == jnp.float32 else 2e-2
        assert jnp.allclose(out.astype(jnp.float32), ref.astype(jnp.float32),
                            atol=tol, rtol=tol), f"mismatch in config {idx}"

    # Train-mode dropout sanity check (inverted-dropout semantics; mask comes from
    # the JAX PRNG, so no torch RNG bit-match).
    S, B, D = 16, 1, 32
    key, xkey, dkey = jax.random.split(key, 3)
    x = jax.random.normal(xkey, (S, B, D), dtype=jnp.float32)
    pe = make_pe_table(D, max_len=64)
    p = 0.5
    out_tr = jax.block_until_ready(
        positional_encoding(x, pe, dropout_p=p, train=True, rng_key=dkey))
    ref = ref_forward(x, pe)
    kept = out_tr != 0.0
    n_kept = int(jnp.sum(kept))
    assert 0 < n_kept < out_tr.size, "dropout mask degenerate"
    assert jnp.allclose(jnp.where(kept, out_tr, 0.0),
                        jnp.where(kept, ref / (1.0 - p), 0.0),
                        atol=1e-5, rtol=1e-5), "kept values not scaled by 1/(1-p)"

    print("KERNEL_OK")
</pallas_src>

<mosaic_0001>
module attributes {stable_mosaic.version = 11 : i64} {
  func.func @_pe_add_kernel(%arg0: i32, %arg1: memref<8x2x32xf32, #tpu.memory_space<vmem>>, %arg2: memref<8x1x32xf32, #tpu.memory_space<vmem>>, %arg3: memref<8x2x32xf32, #tpu.memory_space<vmem>>) attributes {dimension_semantics = [#tpu.dimension_semantics<parallel>], iteration_bounds = array<i64: 1>, scalar_prefetch = 0 : i64, scratch_operands = 0 : i64, tpu.core_type = #tpu.core_type<tc>, window_params = [{transform_indices = @transform_0, window_bounds = array<i64: 8, 2, 32>}, {transform_indices = @transform_1, window_bounds = array<i64: 8, 1, 32>}, {transform_indices = @transform_2, window_bounds = array<i64: 8, 2, 32>}]} {
    %c0 = arith.constant 0 : index
    %c0_0 = arith.constant 0 : index
    %c0_1 = arith.constant 0 : index
    %0 = vector.load %arg1[%c0, %c0_0, %c0_1] : memref<8x2x32xf32, #tpu.memory_space<vmem>>, vector<8x2x32xf32>
    %cst = arith.constant 5.65685415 : f32
    %1 = vector.broadcast %cst : f32 to vector<8x2x32xf32>
    %2 = arith.mulf %0, %1 : vector<8x2x32xf32>
    %c0_2 = arith.constant 0 : index
    %c0_3 = arith.constant 0 : index
    %c0_4 = arith.constant 0 : index
    %3 = vector.load %arg2[%c0_2, %c0_3, %c0_4] : memref<8x1x32xf32, #tpu.memory_space<vmem>>, vector<8x1x32xf32>
    %4 = vector.broadcast %3 : vector<8x1x32xf32> to vector<8x2x32xf32>
    %5 = arith.addf %2, %4 : vector<8x2x32xf32>
    %c0_5 = arith.constant 0 : index
    %c0_6 = arith.constant 0 : index
    %c0_7 = arith.constant 0 : index
    %6 = vector.load %arg3[%c0_5, %c0_6, %c0_7] : memref<8x2x32xf32, #tpu.memory_space<vmem>>, vector<8x2x32xf32>
    tpu.vector_store %arg3[%c0_5, %c0_6, %c0_7], %5 {strides = array<i32>} : memref<8x2x32xf32, #tpu.memory_space<vmem>>, vector<8x2x32xf32>,
    return
  }
  func.func @transform_0(%arg0: i32) -> (i32, i32, i32) {
    %c0_i32 = arith.constant 0 : i32
    %c0_i32_0 = arith.constant 0 : i32
    %c0_i32_1 = arith.constant 0 : i32
    return %arg0, %c0_i32, %c0_i32_0 : i32, i32, i32
  }
  func.func @transform_1(%arg0: i32) -> (i32, i32, i32) {
    %c0_i32 = arith.constant 0 : i32
    %c0_i32_0 = arith.constant 0 : i32
    %c0_i32_1 = arith.constant 0 : i32
    return %arg0, %c0_i32, %c0_i32_0 : i32, i32, i32
  }
  func.func @transform_2(%arg0: i32) -> (i32, i32, i32) {
    %c0_i32 = arith.constant 0 : i32
    %c0_i32_0 = arith.constant 0 : i32
    %c0_i32_1 = arith.constant 0 : i32
    return %arg0, %c0_i32, %c0_i32_0 : i32, i32, i32
  }
}

</mosaic_0001>

<bundles_post_ra>
// kernel: tpu_custom_call.1
= control target key start
LH: loop header
LB: loop body
LE: loop exit
PB: predicated region body
PF: predicated region fallthrough
CT: control target
= control target key end

     0   :  { %vm92_vm0 = vcmask 254976   ;;  %s227_s0 = inlined_call_operand.vmem [shape: f32[8,2,32], index: 0, kind: input, shape index: {}]   ;;  %s228_s1 = inlined_call_operand.vmem [shape: f32[64,1,32], index: 1, kind: input, shape index: {}]   ;;  %s229_s2 = inlined_call_operand.hbm [shape: f32[8,2,32], index: 2, kind: output, shape index: {}]  }
   0x1   :  { %v12_v0 = vld [vmem:[%s227_s0] sm:$0x3]  ;;  %v13_v3 = vld [vmem:[%s227_s0 + $0x2] sm:$0x3]  ;;  %v14_v6 = vld [vmem:[%s227_s0 + $0x4] sm:$0x3] }
   0x2   :  { %v117_v1 = vld [vmem:[%s228_s1] ss:$0 sm:$0xff]  ;;  %v20_v2 = vmul.f32 5.656854, %v12_v0  ;;  %v118_v4 = vld [vmem:[%s228_s1 + $0x1] ss:$0 sm:$0xff] }
   0x3   :  { %v21_v5 = vmul.f32 5.656854, %v13_v3  ;;  %v119_v7 = vld [vmem:[%s228_s1 + $0x2] ss:$0 sm:$0xff]  ;;  %v22_v9 = vmul.f32 5.656854, %v14_v6 }
   0x4   :  { %v84_v8 = vadd.f32 %v117_v1, %v20_v2  ;;  %v15_v10 = vld [vmem:[%s227_s0 + $0x6] sm:$0x3]  ;;  %v120_v11 = vld [vmem:[%s228_s1 + $0x3] ss:$0 sm:$0xff]  ;;  %v16_v14 = vld [vmem:[%s227_s0 + $0x8] sm:$0x3] }
   0x5   :  { %v85_v12 = vadd.f32 %v118_v4, %v21_v5  ;;  %v23_v13 = vmul.f32 5.656854, %v15_v10  ;;  %v121_v15 = vld [vmem:[%s228_s1 + $0x4] ss:$0 sm:$0xff]  ;;  %v86_v16 = vadd.f32 %v119_v7, %v22_v9  ;;  %v24_v17 = vmul.f32 5.656854, %v16_v14 }
   0x6   :  { %93 = vst.msk [vmem:[#allocation2] sm:$0x3] %vm92_vm0, %v84_v8  ;;  %v17_v18 = vld [vmem:[%s227_s0 + $0xa] sm:$0x3]  ;;  %v122_v19 = vld [vmem:[%s228_s1 + $0x5] ss:$0 sm:$0xff] }
   0x7   :  { %94 = vst.msk [vmem:[#allocation2 + $0x2] sm:$0x3] %vm92_vm0, %v85_v12  ;;  %v87_v20 = vadd.f32 %v120_v11, %v23_v13  ;;  %v25_v21 = vmul.f32 5.656854, %v17_v18  ;;  %v18_v22 = vld [vmem:[%s227_s0 + $0xc] sm:$0x3]  ;;  %v88_v24 = vadd.f32 %v121_v15, %v24_v17 }
   0x8   :  { %v123_v23 = vld [vmem:[%s228_s1 + $0x6] ss:$0 sm:$0xff]  ;;  %95 = vst.msk [vmem:[#allocation2 + $0x4] sm:$0x3] %vm92_vm0, %v86_v16  ;;  %v26_v25 = vmul.f32 5.656854, %v18_v22 }
   0x9   :  { %v19_v26 = vld [vmem:[%s227_s0 + $0xe] sm:$0x3]  ;;  %v124_v27 = vld [vmem:[%s228_s1 + $0x7] ss:$0 sm:$0xff]  ;;  %96 = vst.msk [vmem:[#allocation2 + $0x6] sm:$0x3] %vm92_vm0, %v87_v20  ;;  %v89_v28 = vadd.f32 %v122_v19, %v25_v21 }
   0xa   :  { %v27_v29 = vmul.f32 5.656854, %v19_v26 }
   0xb   :  { %7 = vsyncpa [#allocation3], 0  ;;  %s150_s13 = smov [#allocation2]   ;;  %97 = vst.msk [vmem:[#allocation2 + $0x8] sm:$0x3] %vm92_vm0, %v88_v24  ;;  %v90_v30 = vadd.f32 %v123_v23, %v26_v25 }
   0xc   :  { %s106_s14 = sshll.u32 %s150_s13, 4  ;;  %98 = vst.msk [vmem:[#allocation2 + $0xa] sm:$0x3] %vm92_vm0, %v89_v28  ;;  %v91_v31 = vadd.f32 %v124_v27, %v27_v29  ;;  %s107_s14 = int_to_ptr.vmem [resolvable:$true] %s106_s14 }
   0xd   :  { %99 = vst.msk [vmem:[#allocation2 + $0xc] sm:$0x3] %vm92_vm0, %v90_v30  ;;  %s128_s0 = scalar_lea.vmem %s107_s14, 256  ;;  %p133_p1 = scmp.lt.s32.totalorder %s107_s14, %s107_s14 }
   0xe   :  { %100 = vst.msk [vmem:[#allocation2 + $0xe] sm:$0x3] %vm92_vm0, %v91_v31  ;;  %p129_p0 = scmp.ne.s32.totalorder %s107_s14, %s128_s0  ;;  %p134_p2 = scmp.lt.s32.totalorder %s128_s0, %s128_s0 }
  0x10   :  { %p135_p3 = por %p134_p2, %p133_p1 }
  0x12   :  { %p136_p4 = pnand %p135_p3, %p129_p0 }
  0x14   :  { %139 = shalt.err (!%p136_p4)
}
  0x15   :  { %s151_s1 = smov 32   ;;  %s152_s15 = smov 2  }
  0x16   :  { %112 = dma.vmem_to_hbm [thread:$0]  %s107_s14, 256, %s229_s2, [#allocation3], %s151_s1, %s151_s1, %s152_s15  }
  0x17   :  { %148 = dma.done.wait [#allocation3], 256  }
  0x18   :  { %149 = vsyncadd [#allocation3], 4294967040 }
  0x19   :  { %116 = vsyncpa [#allocation3], 1 }

</bundles_post_ra>
